<compile_context>
chip_gen: v7x
topology: tpu7x:2x2x1
jax: 0.10.0
libtpu: 0.0.40
codegen_flags: <defaults>
</compile_context>

<pallas_src>
import functools

import jax
import jax.numpy as jnp
from jax.experimental import pallas as pl
from jax.experimental.pallas import tpu as pltpu

N_LATENT = 64
LANE = 128           # TPU lane width; fc3 compute layout padded to a multiple of this
NEG_BIG = -1e30      # folded softmax mask: padded-column bias (exp underflows to 0)


def _round_up(n, m):
    return ((n + m - 1) // m) * m


def _mlp_kernel(x_ref, w1_ref, b1_ref, w2_ref, b2_ref, w3_ref, b3_ref,
                *out_refs, action_dim: int, heads: str):
    """One batch tile: shared fc1/fc2/fc3 trunk, then the selected head(s).

    x_ref : (TB, D_in) f32
    w1_ref: (D_in, 64) f32   b1_ref: (1, 64)  f32
    w2_ref: (64, 64)   f32   b2_ref: (1, 64)  f32
    w3_ref: (64, A_pad) f32  (zero-padded cols)
    b3_ref: (1, A_pad)  f32  (padded cols = NEG_BIG -> softmax mask folded into bias)
    out_refs: subset of (probs_ref, values_ref), each (TB, action_dim) f32
    """
    x = x_ref[...]
    h = jnp.tanh(jnp.dot(x, w1_ref[...], preferred_element_type=jnp.float32)
                 + b1_ref[...])
    h = jnp.tanh(jnp.dot(h, w2_ref[...], preferred_element_type=jnp.float32)
                 + b2_ref[...])
    logits = jnp.dot(h, w3_ref[...], preferred_element_type=jnp.float32) + b3_ref[...]

    it = iter(out_refs)
    if heads in ("both", "actor"):
        probs_ref = next(it)
        # Numerically stable softmax; padded columns are ~-1e30 so exp -> 0 and the
        # max / sum over the full 128 lanes are unaffected.
        m = jnp.max(logits, axis=-1, keepdims=True)
        e = jnp.exp(logits - m)
        denom = jnp.sum(e, axis=-1, keepdims=True)
        probs = e * pl.reciprocal(denom, approx=False)   # EUP, exact
        probs_ref[...] = probs[:, :action_dim].astype(probs_ref.dtype)
    if heads in ("both", "critic"):
        values_ref = next(it)
        values_ref[...] = logits[:, :action_dim].astype(values_ref.dtype)


def mlp_forward_pallas(x, params, *, heads: str = "both", block_b: int = 2048):
    """Fused trunk + head(s) in a single pallas_call.

    x: (B, D_in) float32.  params: dict of w1,b1,w2,b2,w3,b3 stored as (in, out).
    heads: "actor" -> softmax probs, "critic" -> raw fc3 output, "both" -> (probs, values).
    """
    assert heads in ("actor", "critic", "both")
    w1, b1, w2, b2, w3, b3 = (params[k] for k in ("w1", "b1", "w2", "b2", "w3", "b3"))
    B, d_in = x.shape
    A = w3.shape[1]
    a_pad = _round_up(max(A, LANE), LANE)

    # Lane-dense fc3 compute layout: zero-pad weight columns; bias NEG_BIG in the
    # padded columns folds the softmax mask into the bias add.
    w3p = jnp.zeros((N_LATENT, a_pad), jnp.float32).at[:, :A].set(w3)
    b3p = jnp.full((1, a_pad), NEG_BIG, jnp.float32).at[:, :A].set(b3)

    # Batch tiling: sublane-aligned (multiple of 8), big tile to amortize per-step
    # overhead; prefer >=2 grid steps so "parallel" can feed both v7x TensorCores.
    tb = min(_round_up(block_b, 8), _round_up(B, 8))
    b_pad = _round_up(B, tb)
    if b_pad // tb == 1 and tb >= 16:
        tb = _round_up(tb // 2, 8)
        b_pad = _round_up(B, tb)
    if b_pad != B:
        x = jnp.pad(x, ((0, b_pad - B), (0, 0)))

    n_out = 2 if heads == "both" else 1
    out_shape = tuple(jax.ShapeDtypeStruct((b_pad, A), jnp.float32)
                      for _ in range(n_out))
    out_specs = tuple(pl.BlockSpec((tb, A), lambda i: (i, 0))
                      for _ in range(n_out))

    rep = lambda a: pl.BlockSpec(a.shape, lambda i: (0,) * a.ndim)  # replicated weights
    kernel = functools.partial(_mlp_kernel, action_dim=A, heads=heads)

    flops = 2 * b_pad * (d_in * N_LATENT + N_LATENT * N_LATENT + N_LATENT * a_pad)
    transcendentals = b_pad * (2 * N_LATENT + (a_pad if heads != "critic" else 0))
    bytes_accessed = 4 * (b_pad * d_in + n_out * b_pad * A
                          + w1.size + b1.size + w2.size + b2.size
                          + w3p.size + b3p.size)

    outs = pl.pallas_call(
        kernel,
        out_shape=out_shape,
        grid=(b_pad // tb,),
        in_specs=[pl.BlockSpec((tb, d_in), lambda i: (i, 0)),
                  rep(w1), rep(b1), rep(w2), rep(b2), rep(w3p), rep(b3p)],
        out_specs=out_specs,
        compiler_params=pltpu.CompilerParams(
            dimension_semantics=("parallel",)),          # megacore sharding on v7x
        cost_estimate=pl.CostEstimate(flops=flops,
                                      transcendentals=transcendentals,
                                      bytes_accessed=bytes_accessed),
    )(x, w1, b1, w2, b2, w3p, b3p)

    outs = tuple(o[:B] for o in outs)
    return outs if heads == "both" else outs[0]


def mlp_forward(x, params, *, is_actor: bool):
    """Matches MLPModel.forward: softmax probs if is_actor else raw fc3 output.
    The unused head is skipped entirely (no compute, no HBM writeback)."""
    return mlp_forward_pallas(x, params, heads="actor" if is_actor else "critic")


def init_params(key, input_dim, action_dim):
    """Matches MLPModel._ortho_ini (which, despite the name, uses Uniform[0,1)
    weights and zero biases). Weights stored transposed as (in, out)."""
    k1, k2, k3 = jax.random.split(key, 3)
    return {
        "w1": jax.random.uniform(k1, (input_dim, N_LATENT), jnp.float32),
        "b1": jnp.zeros((1, N_LATENT), jnp.float32),
        "w2": jax.random.uniform(k2, (N_LATENT, N_LATENT), jnp.float32),
        "b2": jnp.zeros((1, N_LATENT), jnp.float32),
        "w3": jax.random.uniform(k3, (N_LATENT, action_dim), jnp.float32),
        "b3": jnp.zeros((1, action_dim), jnp.float32),
    }


def _reference(x, params):
    """Pure-JAX f32 reference of MLPModel.forward (both heads)."""
    h = jnp.tanh(x @ params["w1"] + params["b1"])
    h = jnp.tanh(h @ params["w2"] + params["b2"])
    logits = h @ params["w3"] + params["b3"]
    return jax.nn.softmax(logits, axis=-1), logits


if __name__ == "__main__":
    batch, input_dim, action_dim = 2, 16, 4

    root = jax.random.PRNGKey(0)
    key_x, key_p = jax.random.split(root)

    x = jax.random.normal(key_x, (batch, input_dim), jnp.float32)
    params = init_params(key_p, input_dim, action_dim)

    # Fused launch: both heads from one shared trunk.
    probs, values = mlp_forward_pallas(x, params, heads="both")
    jax.block_until_ready((probs, values))

    assert probs.shape == (batch, action_dim)
    assert values.shape == (batch, action_dim)
    # Exact reciprocal -> softmax rows sum to 1 within f32 ulps.
    assert jnp.allclose(jnp.sum(probs, axis=-1), 1.0, atol=1e-4)

    ref_probs, ref_logits = _reference(x, params)
    assert jnp.allclose(probs, ref_probs, atol=1e-3, rtol=1e-3)
    assert jnp.allclose(values, ref_logits, atol=1e-3, rtol=1e-3)

    # Single-head paths (what MLPModel.forward returns) match the fused outputs.
    actor_out = mlp_forward(x, params, is_actor=True)
    critic_out = mlp_forward(x, params, is_actor=False)
    jax.block_until_ready((actor_out, critic_out))
    assert jnp.allclose(actor_out, probs, atol=1e-5)
    assert jnp.allclose(critic_out, values, atol=1e-5)

    print("KERNEL_OK")
</pallas_src>

<mosaic_0001>
module attributes {stable_mosaic.version = 11 : i64} {
  func.func @_mlp_kernel(%arg0: i32, %arg1: memref<8x16xf32, #tpu.memory_space<vmem>>, %arg2: memref<16x64xf32, #tpu.memory_space<vmem>>, %arg3: memref<1x64xf32, #tpu.memory_space<vmem>>, %arg4: memref<64x64xf32, #tpu.memory_space<vmem>>, %arg5: memref<1x64xf32, #tpu.memory_space<vmem>>, %arg6: memref<64x128xf32, #tpu.memory_space<vmem>>, %arg7: memref<1x128xf32, #tpu.memory_space<vmem>>, %arg8: memref<8x4xf32, #tpu.memory_space<vmem>>, %arg9: memref<8x4xf32, #tpu.memory_space<vmem>>) attributes {dimension_semantics = [#tpu.dimension_semantics<parallel>], iteration_bounds = array<i64: 1>, scalar_prefetch = 0 : i64, scratch_operands = 0 : i64, tpu.core_type = #tpu.core_type<tc>, window_params = [{transform_indices = @transform_0, window_bounds = array<i64: 8, 16>}, {pipeline_mode = #tpu.pipeline_mode<synchronous>, transform_indices = @transform_1, window_bounds = array<i64: 16, 64>}, {pipeline_mode = #tpu.pipeline_mode<synchronous>, transform_indices = @transform_2, window_bounds = array<i64: 1, 64>}, {pipeline_mode = #tpu.pipeline_mode<synchronous>, transform_indices = @transform_3, window_bounds = array<i64: 64, 64>}, {pipeline_mode = #tpu.pipeline_mode<synchronous>, transform_indices = @transform_4, window_bounds = array<i64: 1, 64>}, {pipeline_mode = #tpu.pipeline_mode<synchronous>, transform_indices = @transform_5, window_bounds = array<i64: 64, 128>}, {pipeline_mode = #tpu.pipeline_mode<synchronous>, transform_indices = @transform_6, window_bounds = array<i64: 1, 128>}, {transform_indices = @transform_7, window_bounds = array<i64: 8, 4>}, {transform_indices = @transform_8, window_bounds = array<i64: 8, 4>}]} {
    %c0 = arith.constant 0 : index
    %c0_0 = arith.constant 0 : index
    %0 = vector.load %arg1[%c0, %c0_0] : memref<8x16xf32, #tpu.memory_space<vmem>>, vector<8x16xf32>
    %c0_1 = arith.constant 0 : index
    %c0_2 = arith.constant 0 : index
    %1 = vector.load %arg2[%c0_1, %c0_2] : memref<16x64xf32, #tpu.memory_space<vmem>>, vector<16x64xf32>
    %cst = arith.constant dense<0.000000e+00> : vector<8x64xf32>
    %2 = tpu.matmul %0, %1, %cst {dimension_numbers = #tpu.dot_dimension_numbers<[1], [0], [0], [1], [0, 0, 1, 1], [], []>} : vector<8x16xf32>, vector<16x64xf32>, vector<8x64xf32> -> vector<8x64xf32>
    %c0_3 = arith.constant 0 : index
    %c0_4 = arith.constant 0 : index
    %3 = vector.load %arg3[%c0_3, %c0_4] : memref<1x64xf32, #tpu.memory_space<vmem>>, vector<1x64xf32>
    %4 = vector.broadcast %3 : vector<1x64xf32> to vector<8x64xf32>
    %5 = arith.addf %2, %4 : vector<8x64xf32>
    %6 = math.tanh %5 : vector<8x64xf32>
    %c0_5 = arith.constant 0 : index
    %c0_6 = arith.constant 0 : index
    %7 = vector.load %arg4[%c0_5, %c0_6] : memref<64x64xf32, #tpu.memory_space<vmem>>, vector<64x64xf32>
    %cst_7 = arith.constant dense<0.000000e+00> : vector<8x64xf32>
    %8 = tpu.matmul %6, %7, %cst_7 {dimension_numbers = #tpu.dot_dimension_numbers<[1], [0], [0], [1], [0, 0, 1, 1], [], []>} : vector<8x64xf32>, vector<64x64xf32>, vector<8x64xf32> -> vector<8x64xf32>
    %c0_8 = arith.constant 0 : index
    %c0_9 = arith.constant 0 : index
    %9 = vector.load %arg5[%c0_8, %c0_9] : memref<1x64xf32, #tpu.memory_space<vmem>>, vector<1x64xf32>
    %10 = vector.broadcast %9 : vector<1x64xf32> to vector<8x64xf32>
    %11 = arith.addf %8, %10 : vector<8x64xf32>
    %12 = math.tanh %11 : vector<8x64xf32>
    %c0_10 = arith.constant 0 : index
    %c0_11 = arith.constant 0 : index
    %13 = vector.load %arg6[%c0_10, %c0_11] : memref<64x128xf32, #tpu.memory_space<vmem>>, vector<64x128xf32>
    %cst_12 = arith.constant dense<0.000000e+00> : vector<8x128xf32>
    %14 = tpu.matmul %12, %13, %cst_12 {dimension_numbers = #tpu.dot_dimension_numbers<[1], [0], [0], [1], [0, 0, 1, 1], [], []>} : vector<8x64xf32>, vector<64x128xf32>, vector<8x128xf32> -> vector<8x128xf32>
    %c0_13 = arith.constant 0 : index
    %c0_14 = arith.constant 0 : index
    %15 = vector.load %arg7[%c0_13, %c0_14] : memref<1x128xf32, #tpu.memory_space<vmem>>, vector<1x128xf32>
    %16 = vector.broadcast %15 : vector<1x128xf32> to vector<8x128xf32>
    %17 = arith.addf %14, %16 : vector<8x128xf32>
    %cst_15 = arith.constant dense<0xFF800000> : vector<8xf32>
    %18 = vector.multi_reduction <maximumf>, %17, %cst_15 [1] : vector<8x128xf32> to vector<8xf32>
    %19 = vector.shape_cast %18 : vector<8xf32> to vector<8x1xf32>
    %20 = vector.broadcast %19 : vector<8x1xf32> to vector<8x128xf32>
    %21 = arith.subf %17, %20 : vector<8x128xf32>
    %22 = math.exp %21 : vector<8x128xf32>
    %cst_16 = arith.constant dense<0.000000e+00> : vector<8xf32>
    %23 = vector.multi_reduction <add>, %22, %cst_16 [1] : vector<8x128xf32> to vector<8xf32>
    %24 = vector.shape_cast %23 : vector<8xf32> to vector<8x1xf32>
    %25 = tpu.reciprocal %24 : vector<8x1xf32> -> vector<8x1xf32>
    %26 = vector.broadcast %25 : vector<8x1xf32> to vector<8x128xf32>
    %27 = arith.mulf %22, %26 : vector<8x128xf32>
    %28 = vector.extract_strided_slice %27 {offsets = [0, 0], sizes = [8, 4], strides = [1, 1]} : vector<8x128xf32> to vector<8x4xf32>
    %c0_17 = arith.constant 0 : index
    %c0_18 = arith.constant 0 : index
    %29 = vector.load %arg8[%c0_17, %c0_18] : memref<8x4xf32, #tpu.memory_space<vmem>>, vector<8x4xf32>
    tpu.vector_store %arg8[%c0_17, %c0_18], %28 {strides = array<i32>} : memref<8x4xf32, #tpu.memory_space<vmem>>, vector<8x4xf32>,
    %30 = vector.extract_strided_slice %17 {offsets = [0, 0], sizes = [8, 4], strides = [1, 1]} : vector<8x128xf32> to vector<8x4xf32>
    %c0_19 = arith.constant 0 : index
    %c0_20 = arith.constant 0 : index
    %31 = vector.load %arg9[%c0_19, %c0_20] : memref<8x4xf32, #tpu.memory_space<vmem>>, vector<8x4xf32>
    tpu.vector_store %arg9[%c0_19, %c0_20], %30 {strides = array<i32>} : memref<8x4xf32, #tpu.memory_space<vmem>>, vector<8x4xf32>,
    return
  }
  func.func @transform_0(%arg0: i32) -> (i32, i32) {
    %c0_i32 = arith.constant 0 : i32
    %c0_i32_0 = arith.constant 0 : i32
    return %arg0, %c0_i32 : i32, i32
  }
  func.func @transform_1(%arg0: i32) -> (i32, i32) {
    %c0_i32 = arith.constant 0 : i32
    %c0_i32_0 = arith.constant 0 : i32
    %c0_i32_1 = arith.constant 0 : i32
    return %c0_i32, %c0_i32_0 : i32, i32
  }
  func.func @transform_2(%arg0: i32) -> (i32, i32) {
    %c0_i32 = arith.constant 0 : i32
    %c0_i32_0 = arith.constant 0 : i32
    %c0_i32_1 = arith.constant 0 : i32
    return %c0_i32, %c0_i32_0 : i32, i32
  }
  func.func @transform_3(%arg0: i32) -> (i32, i32) {
    %c0_i32 = arith.constant 0 : i32
    %c0_i32_0 = arith.constant 0 : i32
    %c0_i32_1 = arith.constant 0 : i32
    return %c0_i32, %c0_i32_0 : i32, i32
  }
  func.func @transform_4(%arg0: i32) -> (i32, i32) {
    %c0_i32 = arith.constant 0 : i32
    %c0_i32_0 = arith.constant 0 : i32
    %c0_i32_1 = arith.constant 0 : i32
    return %c0_i32, %c0_i32_0 : i32, i32
  }
  func.func @transform_5(%arg0: i32) -> (i32, i32) {
    %c0_i32 = arith.constant 0 : i32
    %c0_i32_0 = arith.constant 0 : i32
    %c0_i32_1 = arith.constant 0 : i32
    return %c0_i32, %c0_i32_0 : i32, i32
  }
  func.func @transform_6(%arg0: i32) -> (i32, i32) {
    %c0_i32 = arith.constant 0 : i32
    %c0_i32_0 = arith.constant 0 : i32
    %c0_i32_1 = arith.constant 0 : i32
    return %c0_i32, %c0_i32_0 : i32, i32
  }
  func.func @transform_7(%arg0: i32) -> (i32, i32) {
    %c0_i32 = arith.constant 0 : i32
    %c0_i32_0 = arith.constant 0 : i32
    return %arg0, %c0_i32 : i32, i32
  }
  func.func @transform_8(%arg0: i32) -> (i32, i32) {
    %c0_i32 = arith.constant 0 : i32
    %c0_i32_0 = arith.constant 0 : i32
    return %arg0, %c0_i32 : i32, i32
  }
}

</mosaic_0001>

<bundles_post_ra>
// kernel: tpu_custom_call.1
= control target key start
LH: loop header
LB: loop body
LE: loop exit
PB: predicated region body
PF: predicated region fallthrough
CT: control target
= control target key end

     0   :  { %14 = vsyncpa [#allocation3], 0  ;;  %s708_s0 = inlined_call_operand.hbm [shape: f32[8,16], index: 0, kind: input, shape index: {}]   ;;  %s709_s1 = inlined_call_operand.hbm [shape: f32[16,64], index: 1, kind: input, shape index: {}]   ;;  %s710_s2 = inlined_call_operand.vmem [shape: f32[1,64], index: 2, kind: input, shape index: {}]   ;;  %s711_s3 = inlined_call_operand.hbm [shape: f32[64,64], index: 3, kind: input, shape index: {}]   ;;  %s712_s4 = inlined_call_operand.vmem [shape: f32[1,64], index: 4, kind: input, shape index: {}]   ;;  %s713_s5 = inlined_call_operand.hbm [shape: f32[64,128], index: 5, kind: input, shape index: {}]   ;;  %s714_s6 = inlined_call_operand.vmem [shape: f32[1,128], index: 6, kind: input, shape index: {}]   ;;  %s715_s7 = inlined_call_operand.vmem [shape: f32[8,4], index: 7, kind: output, shape index: {0}]   ;;  %s716_s8 = inlined_call_operand.vmem [shape: f32[8,4], index: 8, kind: output, shape index: {1}]  }
   0x1   :  { %15 = vsyncpa [#allocation5], 0 }
   0x2   :  { %16 = vsyncpa [#allocation8], 0  ;;  %s577_s27 = smov [#allocation4]   ;;  %s483_s9 = scalar_lea.hbm %s709_s1, 256 }
   0x3   :  { %s32_s28 = sshll.u32 %s577_s27, 4  ;;  %p484_p0 = scmp.ne.s32.totalorder %s709_s1, %s483_s9  ;;  %s33_s28 = int_to_ptr.vmem [resolvable:$true] %s32_s28 }
   0x4   :  { %p487_p1 = scmp.lt.u32.totalorder %s483_s9, %s709_s1 }
   0x6   :  { %p489_p2 = pnand %p487_p1, %p484_p0 }
   0x8   :  { %492 = shalt.err (!%p489_p2)
}
   0x9   :  { %s493_s14 = scalar_lea.vmem %s33_s28, 256  ;;  %p498_p4 = scmp.lt.s32.totalorder %s33_s28, %s33_s28 }
   0xa   :  { %p494_p3 = scmp.ne.s32.totalorder %s33_s28, %s493_s14  ;;  %p499_p5 = scmp.lt.s32.totalorder %s493_s14, %s493_s14 }
   0xc   :  { %p500_p6 = por %p499_p5, %p498_p4 }
   0xe   :  { %p501_p7 = pnand %p500_p6, %p494_p3 }
  0x10   :  { %504 = shalt.err (!%p501_p7)
}
  0x11   :  { %s578_s15 = smov 128   ;;  %s579_s16 = smov 8  }
  0x12   :  { %38 = dma.hbm_to_vmem [thread:$0]  %s709_s1, 256, %s33_s28, [#allocation5], %s578_s15, %s578_s15, %s579_s16  }
  0x13   :  { %s580_s19 = smov [#allocation2]   ;;  %s581_s21 = smov [#allocation6]  }
  0x14   :  { %s23_s20 = sshll.u32 %s580_s19, 4  ;;  %s46_s22 = sshll.u32 %s581_s21, 4  ;;  %s24_s20 = int_to_ptr.vmem [resolvable:$true] %s23_s20  ;;  %s47_s22 = int_to_ptr.vmem [resolvable:$true] %s46_s22 }
  0x15   :  { %s505_s25 = scalar_lea.hbm %s708_s0, 128 }
  0x16   :  { %p506_p8 = scmp.ne.s32.totalorder %s708_s0, %s505_s25  ;;  %p509_p9 = scmp.lt.u32.totalorder %s505_s25, %s708_s0 }
  0x18   :  { %p511_p10 = pnand %p509_p9, %p506_p8 }
  0x1a   :  { %514 = shalt.err (!%p511_p10)
}
  0x1b   :  { %s515_s1 = scalar_lea.vmem %s24_s20, 128  ;;  %p520_p12 = scmp.lt.s32.totalorder %s24_s20, %s24_s20 }
  0x1c   :  { %p516_p11 = scmp.ne.s32.totalorder %s24_s20, %s515_s1  ;;  %p521_p13 = scmp.lt.s32.totalorder %s515_s1, %s515_s1 }
  0x1e   :  { %p522_p0 = por %p521_p13, %p520_p12 }
  0x20   :  { %p523_p1 = pnand %p522_p0, %p516_p11 }
  0x22   :  { %526 = shalt.err (!%p523_p1)
}
  0x23   :  { %26 = dma.hbm_to_vmem [thread:$0]  %s708_s0, 128, %s24_s20, [#allocation3]  }
  0x24   :  { %s527_s12 = scalar_lea.hbm %s711_s3, 1024 }
  0x25   :  { %p528_p2 = scmp.ne.s32.totalorder %s711_s3, %s527_s12  ;;  %p531_p3 = scmp.lt.u32.totalorder %s527_s12, %s711_s3 }
  0x27   :  { %p533_p4 = pnand %p531_p3, %p528_p2 }
  0x29   :  { %536 = shalt.err (!%p533_p4)
}
  0x2a   :  { %s537_s19 = scalar_lea.vmem %s47_s22, 1024  ;;  %p542_p6 = scmp.lt.s32.totalorder %s47_s22, %s47_s22 }
  0x2b   :  { %p538_p5 = scmp.ne.s32.totalorder %s47_s22, %s537_s19  ;;  %p543_p7 = scmp.lt.s32.totalorder %s537_s19, %s537_s19 }
  0x2d   :  { %p544_p8 = por %p543_p7, %p542_p6 }
  0x2f   :  { %p545_p9 = pnand %p544_p8, %p538_p5 }
  0x31   :  { %548 = shalt.err (!%p545_p9)
}
  0x32   :  { %52 = dma.hbm_to_vmem [thread:$0]  %s711_s3, 1024, %s47_s22, [#allocation5], %s578_s15, %s578_s15, %s579_s16  }
  0x33   :  { %s582_s21 = smov [#allocation7]   ;;  %s549_s26 = scalar_lea.hbm %s713_s5, 1024 }
  0x34   :  { %s60_s23 = sshll.u32 %s582_s21, 4  ;;  %p550_p10 = scmp.ne.s32.totalorder %s713_s5, %s549_s26  ;;  %s61_s23 = int_to_ptr.vmem [resolvable:$true] %s60_s23 }
  0x35   :  { %p553_p11 = scmp.lt.u32.totalorder %s549_s26, %s713_s5 }
  0x37   :  { %p555_p12 = pnand %p553_p11, %p550_p10 }
  0x39   :  { %558 = shalt.err (!%p555_p12)
}
  0x3a   :  { %s559_s28 = scalar_lea.vmem %s61_s23, 1024  ;;  %p564_p0 = scmp.lt.s32.totalorder %s61_s23, %s61_s23 }
  0x3b   :  { %p560_p13 = scmp.ne.s32.totalorder %s61_s23, %s559_s28  ;;  %p565_p1 = scmp.lt.s32.totalorder %s559_s28, %s559_s28 }
  0x3d   :  { %p566_p2 = por %p565_p1, %p564_p0 }
  0x3f   :  { %p567_p3 = pnand %p566_p2, %p560_p13 }
  0x41   :  { %570 = shalt.err (!%p567_p3)
}
  0x42   :  { %66 = dma.hbm_to_vmem [thread:$0]  %s713_s5, 1024, %s61_s23, [#allocation8], %s578_s15, %s578_s15, %s579_s16  }
  0x43   :  { %571 = dma.done.wait [#allocation3], 128  }
  0x44   :  { %572 = vsyncadd [#allocation3], 4294967168 }
  0x45   :  { %573 = dma.done.wait [#allocation5], 1280  }
  0x46   :  { %574 = vsyncadd [#allocation5], 4294966016 }
  0x47   :  { %575 = dma.done.wait [#allocation8], 1024  }
  0x48   :  { %576 = vsyncadd [#allocation8], 4294966272  ;;  %v583_v0 = vmov 0.0|0.0   ;;  %vm584_vm0 = vmmov 0   ;;  %v585_v1 = vmov 0.0   ;;  %v82_v2 = vld [vmem:[#allocation4] sm:$0xff] }
  0x49   :  { %439 = vmatprep.subr.bf16.mxu0 %v583_v0  ;;  %398 = vmatprep.mubr.msk.f32.mxu0 %vm584_vm0, %v585_v1  ;;  %v83_v3 = vld [vmem:[#allocation4 + $0x8] sm:$0xff]  ;;  %v166_v5 = vld [vmem:[#allocation6] sm:$0xff]  ;;  %v167_v6 = vld [vmem:[#allocation6 + $0x8] sm:$0xff]  ;;  %vm91_vm1 = vcmask 130048   ;;  %vm181_vm2 = vcmask 523264   ;;  %vm353_vm3 = vcmask 31744  }
  0x4a   :  { %442 = vmatprep.subr.bf16.mxu1 %v583_v0  ;;  %417 = vmatprep.mubr.msk.f32.mxu1 %vm584_vm0, %v585_v1  ;;  %v440_v4 = vpack.c.bf16 %v83_v3, %v82_v2  ;;  %v443_v7 = vpack.c.bf16 %v167_v6, %v166_v5  ;;  %v81_v8 = vld [vmem:[#allocation2] sm:$0xff]  ;;  %v168_v9 = vld [vmem:[#allocation6 + $0x10] sm:$0xff]  ;;  %v169_v10 = vld [vmem:[#allocation6 + $0x18] sm:$0xff] }
  0x4b   :  { %v446_v11 = vpack.c.bf16 %v169_v10, %v168_v9  ;;  %v170_v12 = vld [vmem:[#allocation6 + $0x20] sm:$0xff]  ;;  %v171_v13 = vld [vmem:[#allocation6 + $0x28] sm:$0xff]  ;;  %v172_v15 = vld [vmem:[#allocation6 + $0x30] sm:$0xff] }
  0x4c   :  { %441 = vmatpush3.bf16.msra.mxu0 %v440_v4  ;;  %444 = vmatpush3.bf16.msra.mxu1 %v443_v7  ;;  %v449_v14 = vpack.c.bf16 %v171_v13, %v170_v12  ;;  %v173_v16 = vld [vmem:[#allocation6 + $0x38] sm:$0xff]  ;;  %v256_v18 = vld [vmem:[#allocation7] sm:$0xff]  ;;  %v257_v19 = vld [vmem:[#allocation7 + $0x8] sm:$0xff] }
  0x4d   :  { %454 = vmatprep.subr.bf16.mxu0 %v583_v0  ;;  %445 = vmatprep.subr.bf16.mxu1 %v583_v0  ;;  %v452_v17 = vpack.c.bf16 %v173_v16, %v172_v15  ;;  %v455_v20 = vpack.c.bf16 %v257_v19, %v256_v18  ;;  %v367_v21 = vld [vmem:[%s710_s2] ss:$0 sm:$0xff]  ;;  %v258_v26 = vld [vmem:[#allocation7 + $0x10] sm:$0xff]  ;;  %v259_v27 = vld [vmem:[#allocation7 + $0x18] sm:$0xff] }
  0x4e   :  { %v458_v28 = vpack.c.bf16 %v259_v27, %v258_v26  ;;  %v260_v29 = vld [vmem:[#allocation7 + $0x20] sm:$0xff]  ;;  %v261_v30 = vld [vmem:[#allocation7 + $0x28] sm:$0xff]  ;;  %v262_v32 = vld [vmem:[#allocation7 + $0x30] sm:$0xff] }
  0x4f   :  { %399 = vmatmul.mubr.msk.f32.vlgmr.msra.gmra.mrb[0].mxu0 %vm91_vm1, %v81_v8  ;;  %v461_v31 = vpack.c.bf16 %v261_v30, %v260_v29  ;;  %v263_v33 = vld [vmem:[#allocation7 + $0x38] sm:$0xff]  ;;  %v369_v35 = vld [vmem:[%s712_s4] ss:$0 sm:$0xff] }
  0x50   :  { %436 = vmatprep.mubr.msk.f32.mxu0 %vm584_vm0, %v585_v1  ;;  %447 = vmatpush3.bf16.msra.mxu1 %v446_v11  ;;  %v464_v34 = vpack.c.bf16 %v263_v33, %v262_v32  ;;  %v371_v40 = vld [vmem:[%s714_s6] ss:$0 sm:$0xff] }
  0x51   :  { %448 = vmatprep.subr.bf16.mxu1 %v583_v0  ;;  %456 = vmatpush3.bf16.msra.mxu0 %v455_v20 }
  0x52   :  { %457 = vmatprep.subr.bf16.mxu0 %v583_v0 }
  0x54   :  { %450 = vmatpush3.bf16.msra.mxu1 %v449_v14 }
  0x55   :  { %451 = vmatprep.subr.bf16.mxu1 %v583_v0  ;;  %459 = vmatpush3.bf16.msra.mxu0 %v458_v28 }
  0x56   :  { %460 = vmatprep.subr.bf16.mxu0 %v583_v0 }
  0x58   :  { %453 = vmatpush3.bf16.msra.mxu1 %v452_v17 }
  0x59   :  { %462 = vmatpush3.bf16.msra.mxu0 %v461_v31 }
  0x5a   :  { %463 = vmatprep.subr.bf16.mxu0 %v583_v0 }
  0x5d   :  { %465 = vmatpush3.bf16.msra.mxu0 %v464_v34 }
 0x122   :  { %v161_v22 = vpop.f32.mrb[0].mxu0 }
 0x123   :  { %v162_v23 = vadd.f32 %v367_v21, %v161_v22  ;;  %v400_v24 = vpop.f32.mrb[1].mxu0 }
 0x125   :  { %475 = vtanh.f32 %v162_v23 }
 0x12f   :  { %v476_v25 = vpop.eup %475 }
 0x130   :  { %418 = vmatmul.mubr.msk.f32.vlgmr.msra.gmra.mrb[0].mxu1 %vm181_vm2, %v476_v25 }
 0x203   :  { %v251_v36 = vpop.f32.mrb[0].mxu1 }
 0x204   :  { %v252_v37 = vadd.f32 %v369_v35, %v251_v36  ;;  %v419_v38 = vpop.f32.mrb[1].mxu1 }
 0x206   :  { %477 = vtanh.f32 %v252_v37 }
 0x210   :  { %v478_v39 = vpop.eup %477 }
 0x211   :  { %437 = vmatmul.mubr.msk.f32.vlgmr.msra.gmra.mrb[2].mxu0 %vm181_vm2, %v478_v39 }
 0x2e4   :  { %v340_v41 = vpop.f32.mrb[2].mxu0 }
 0x2e5   :  { %v341_v42 = vadd.f32 %v371_v40, %v340_v41  ;;  %v438_v43 = vpop.f32.mrb[3].mxu0 }
 0x2e7   :  { %355 = vst.msk [vmem:[%s716_s8] sm:$0xff] %vm353_vm3, %v341_v42  ;;  %344 = vmax.xlane.f32.xlu0 %v341_v42 }
 0x374   :  { %v345_v44 = vpop.xlane.xlu0 %344 }
 0x375   :  { %v346_v45 = vsub.f32 %v341_v42, %v345_v44 }
 0x377   :  { %v347_v46 = vmul.f32 1.442695, %v346_v45 }
 0x379   :  { %479 = vpow2.f32 %v347_v46 }
 0x383   :  { %v480_v47 = vpop.eup %479 }
 0x384   :  { %349 = vadd.xlane.f32.xlu0 %v480_v47 }
 0x411   :  { %v350_v48 = vpop.xlane.xlu0 %349 }
 0x412   :  { %481 = vrcp.f32 %v350_v48 }
 0x41c   :  { %v482_v49 = vpop.eup %481 }
 0x41d   :  { %v352_v50 = vmul.f32 %v482_v49, %v480_v47 }
 0x41f   :  { %354 = vst.msk [vmem:[%s715_s7] sm:$0xff] %vm353_vm3, %v352_v50 }
 0x420   :  { %364 = vsyncpa [#allocation3], 1 }
 0x421   :  { %365 = vsyncpa [#allocation5], 1 }
 0x422   :  { %366 = vsyncpa [#allocation8], 1 }

</bundles_post_ra>
